<compile_context>
chip_gen: v5e
topology: v5e:2x2
jax: 0.10.0
libtpu: 0.0.40
codegen_flags: <defaults>
</compile_context>

<pallas_src>
import functools
import math

import numpy as np
import jax
import jax.numpy as jnp
from jax.experimental import pallas as pl
from jax.experimental.pallas import tpu as pltpu


# ---------------------------------------------------------------------------
# Parameter construction (deterministic, mirrors STFT.__init__)
# ---------------------------------------------------------------------------
def make_stft_weights(n_fft, win_length, dtype=np.float32):
    # periodic Hann window (librosa.filters.get_window('hann', N, fftbins=True))
    n = np.arange(win_length)
    fft_window = 0.5 - 0.5 * np.cos(2.0 * np.pi * n / win_length)
    # librosa.util.pad_center to n_fft
    pad = n_fft - win_length
    lpad = pad // 2
    fft_window = np.pad(fft_window, (lpad, pad - lpad))

    # DFT matrix W[x, y] = exp(-2*pi*i/n_fft)^(x*y)
    x, y = np.meshgrid(np.arange(n_fft), np.arange(n_fft))
    angle = -2.0 * np.pi * (x * y) / n_fft
    out_channels = n_fft // 2 + 1
    # matmul formulation: frames (T, n_fft) @ w (n_fft, F)
    w_real = (np.cos(angle)[:, :out_channels] * fft_window[:, None]).astype(dtype)
    w_imag = (np.sin(angle)[:, :out_channels] * fft_window[:, None]).astype(dtype)
    return w_real, w_imag  # each (n_fft, F)


def _round_up(a, b):
    return ((a + b - 1) // b) * b


def _make_fused_weights(n_fft, win_length, f_pad, dtype=np.float32):
    """Return lane-dense fused weights of shape (n_fft, 2*f_pad)."""
    w_real, w_imag = make_stft_weights(n_fft, win_length, dtype)
    f = w_real.shape[1]
    wr = np.zeros((n_fft, f_pad), dtype=dtype)
    wi = np.zeros((n_fft, f_pad), dtype=dtype)
    wr[:, :f] = w_real
    wi[:, :f] = w_imag
    return np.concatenate([wr, wi], axis=1)  # (n_fft, 2*f_pad)


# ---------------------------------------------------------------------------
# Pallas kernel: one M-tile of the framed matmul + power spectrum
# ---------------------------------------------------------------------------
def _spectrogram_kernel(frames_ref, w_ref, out_ref, *, f_pad, power):
    # frames_ref: (tM, n_fft)   w_ref: (n_fft, 2*f_pad)   out_ref: (tM, f_pad)
    acc = jnp.dot(frames_ref[...], w_ref[...],
                  preferred_element_type=jnp.float32)       # (tM, 2*f_pad)
    real = acc[:, :f_pad]                                    # lane-aligned static slice
    imag = acc[:, f_pad:]
    spec = real * real + imag * imag
    if power == 2.0:
        pass
    elif power == 1.0:
        spec = jnp.sqrt(spec)                                # single EUP op, not pow
    else:
        spec = spec ** (power * 0.5)
    out_ref[...] = spec.astype(out_ref.dtype)


def spectrogram(x, *, n_fft=256, hop_length=None, win_length=None,
                center=True, pad_mode="reflect", power=2.0, tile_m=256):
    """x: (batch, data_length) float32 -> (batch, 1, time_steps, n_fft//2+1)."""
    if win_length is None:
        win_length = n_fft
    if hop_length is None:
        hop_length = win_length // 4

    B, L = x.shape
    F = n_fft // 2 + 1
    F_pad = _round_up(F, 128)          # lane-dense output / weight columns

    W = jnp.asarray(_make_fused_weights(n_fft, win_length, F_pad))  # (n_fft, 2*F_pad)

    # center padding (glue, plain JAX)
    if center:
        mode = "reflect" if pad_mode == "reflect" else "constant"
        x = jnp.pad(x, ((0, 0), (n_fft // 2, n_fft // 2)), mode=mode)

    Lp = x.shape[1]
    T = (Lp - n_fft) // hop_length + 1

    # frame extraction (glue): (B, T, n_fft) -> flatten to (M, n_fft)
    idx = hop_length * jnp.arange(T)[:, None] + jnp.arange(n_fft)[None, :]
    frames = x[:, idx].reshape(B * T, n_fft)

    M = B * T
    tM = min(int(tile_m), _round_up(M, 8))   # multiple of 8, capped by the work size
    M_pad = _round_up(M, tM)
    if M_pad != M:
        frames = jnp.pad(frames, ((0, M_pad - M), (0, 0)))

    # VMEM budget: resident fused weights + double-buffered frames/out blocks.
    w_bytes = n_fft * 2 * F_pad * 4
    fr_blk_bytes = tM * n_fft * 4
    out_blk_bytes = tM * F_pad * 4
    vmem_needed = w_bytes + 2 * (fr_blk_bytes + out_blk_bytes)
    vmem_limit = int(max(32 * 2**20, min(vmem_needed + 8 * 2**20, 64 * 2**20)))

    cost = pl.CostEstimate(
        flops=2 * M_pad * n_fft * (2 * F_pad) + 3 * M_pad * F_pad,
        transcendentals=0,
        bytes_accessed=M_pad * n_fft * 4 + w_bytes + M_pad * F_pad * 4,
    )

    spec_flat = pl.pallas_call(
        functools.partial(_spectrogram_kernel, f_pad=F_pad, power=power),
        out_shape=jax.ShapeDtypeStruct((M_pad, F_pad), jnp.float32),
        grid_spec=pltpu.PrefetchScalarGridSpec(
            num_scalar_prefetch=0,
            grid=(M_pad // tM,),
            in_specs=[
                pl.BlockSpec((tM, n_fft), lambda i: (i, 0)),        # streamed frames
                pl.BlockSpec((n_fft, 2 * F_pad), lambda i: (0, 0)), # resident weights
            ],
            out_specs=pl.BlockSpec((tM, F_pad), lambda i: (i, 0)),
        ),
        compiler_params=pltpu.CompilerParams(
            dimension_semantics=("parallel",),
            vmem_limit_bytes=vmem_limit,
        ),
        cost_estimate=cost,
    )(frames, W)

    # slice away M / F padding, match PyTorch layout (B, 1, T, n_fft//2+1)
    out = spec_flat[:M, :F].reshape(B, T, F)
    return out[:, None, :, :]


# ---------------------------------------------------------------------------
# Pure-JAX reference for a sanity check
# ---------------------------------------------------------------------------
def spectrogram_ref(x, *, n_fft=256, hop_length=None, win_length=None,
                    center=True, pad_mode="reflect", power=2.0):
    if win_length is None:
        win_length = n_fft
    if hop_length is None:
        hop_length = win_length // 4
    w_real, w_imag = make_stft_weights(n_fft, win_length)
    if center:
        mode = "reflect" if pad_mode == "reflect" else "constant"
        x = jnp.pad(x, ((0, 0), (n_fft // 2, n_fft // 2)), mode=mode)
    Lp = x.shape[1]
    T = (Lp - n_fft) // hop_length + 1
    idx = hop_length * jnp.arange(T)[:, None] + jnp.arange(n_fft)[None, :]
    frames = x[:, idx]
    real = jnp.einsum("btk,kf->btf", frames, jnp.asarray(w_real),
                      precision=jax.lax.Precision.HIGHEST)
    imag = jnp.einsum("btk,kf->btf", frames, jnp.asarray(w_imag),
                      precision=jax.lax.Precision.HIGHEST)
    spec = real ** 2 + imag ** 2
    if power != 2.0:
        spec = spec ** (power / 2.0)
    return spec[:, None, :, :]


if __name__ == "__main__":
    key = jax.random.PRNGKey(0)
    B, L = 2, 1024
    n_fft = 256  # hop = 64, F = 129 (padded to 256 inside the kernel), T = 17
    x = jax.random.normal(key, (B, L), dtype=jnp.float32)

    out = spectrogram(x, n_fft=n_fft)
    out = jax.block_until_ready(out)

    ref = spectrogram_ref(x, n_fft=n_fft)
    assert out.shape == (B, 1, L // (n_fft // 4) + 1, n_fft // 2 + 1), out.shape
    np.testing.assert_allclose(np.asarray(out), np.asarray(ref),
                               rtol=1e-4, atol=1e-3)
    print("KERNEL_OK")
</pallas_src>

<mosaic_0001>
module attributes {stable_mosaic.version = 11 : i64} {
  func.func @_spectrogram_kernel(%arg0: i32, %arg1: memref<40x256xf32, #tpu.memory_space<vmem>>, %arg2: memref<256x512xf32, #tpu.memory_space<vmem>>, %arg3: memref<40x256xf32, #tpu.memory_space<vmem>>) attributes {dimension_semantics = [#tpu.dimension_semantics<parallel>], iteration_bounds = array<i64: 1>, scalar_prefetch = 0 : i64, scratch_operands = 0 : i64, tpu.core_type = #tpu.core_type<tc>, window_params = [{transform_indices = @transform_0, window_bounds = array<i64: 40, 256>}, {pipeline_mode = #tpu.pipeline_mode<synchronous>, transform_indices = @transform_1, window_bounds = array<i64: 256, 512>}, {transform_indices = @transform_2, window_bounds = array<i64: 40, 256>}]} {
    %c0 = arith.constant 0 : index
    %c0_0 = arith.constant 0 : index
    %0 = vector.load %arg1[%c0, %c0_0] : memref<40x256xf32, #tpu.memory_space<vmem>>, vector<40x256xf32>
    %c0_1 = arith.constant 0 : index
    %c0_2 = arith.constant 0 : index
    %1 = vector.load %arg2[%c0_1, %c0_2] : memref<256x512xf32, #tpu.memory_space<vmem>>, vector<256x512xf32>
    %cst = arith.constant dense<0.000000e+00> : vector<40x512xf32>
    %2 = tpu.matmul %0, %1, %cst {dimension_numbers = #tpu.dot_dimension_numbers<[1], [0], [0], [1], [0, 0, 1, 1], [], []>} : vector<40x256xf32>, vector<256x512xf32>, vector<40x512xf32> -> vector<40x512xf32>
    %3 = vector.extract_strided_slice %2 {offsets = [0, 0], sizes = [40, 256], strides = [1, 1]} : vector<40x512xf32> to vector<40x256xf32>
    %4 = vector.extract_strided_slice %2 {offsets = [0, 256], sizes = [40, 256], strides = [1, 1]} : vector<40x512xf32> to vector<40x256xf32>
    %5 = arith.mulf %3, %3 : vector<40x256xf32>
    %6 = arith.mulf %4, %4 : vector<40x256xf32>
    %7 = arith.addf %5, %6 : vector<40x256xf32>
    %c0_3 = arith.constant 0 : index
    %c0_4 = arith.constant 0 : index
    %8 = vector.load %arg3[%c0_3, %c0_4] : memref<40x256xf32, #tpu.memory_space<vmem>>, vector<40x256xf32>
    tpu.vector_store %arg3[%c0_3, %c0_4], %7 {strides = array<i32>} : memref<40x256xf32, #tpu.memory_space<vmem>>, vector<40x256xf32>,
    return
  }
  func.func @transform_0(%arg0: i32) -> (i32, i32) {
    %c0_i32 = arith.constant 0 : i32
    %c0_i32_0 = arith.constant 0 : i32
    return %arg0, %c0_i32 : i32, i32
  }
  func.func @transform_1(%arg0: i32) -> (i32, i32) {
    %c0_i32 = arith.constant 0 : i32
    %c0_i32_0 = arith.constant 0 : i32
    %c0_i32_1 = arith.constant 0 : i32
    return %c0_i32, %c0_i32_0 : i32, i32
  }
  func.func @transform_2(%arg0: i32) -> (i32, i32) {
    %c0_i32 = arith.constant 0 : i32
    %c0_i32_0 = arith.constant 0 : i32
    return %arg0, %c0_i32 : i32, i32
  }
}

</mosaic_0001>

<bundles_post_ra>
// kernel: tpu_custom_call.1
= control target key start
LH: loop header
LB: loop body
LE: loop exit
PB: predicated region body
PF: predicated region fallthrough
CT: control target
= control target key end

     0   :  { %7 = vsyncpa [#allocation3], 0  ;;  %s674_s0 = inlined_call_operand.hbm [shape: f32[40,256], index: 0, kind: input, shape index: {}]   ;;  %s675_s1 = inlined_call_operand.hbm [shape: f32[256,512], index: 1, kind: input, shape index: {}]   ;;  %s676_s2 = inlined_call_operand.hbm [shape: f32[40,256], index: 2, kind: output, shape index: {}]  }
   0x1   :  { %8 = vsyncpa [#allocation6], 0 }
   0x2   :  { %9 = vsyncpa [#allocation4], 0  ;;  %s14_s11 = sshll.u32 %s674_s0, 4  ;;  %s583_s12 = smov [#allocation2]   ;;  %s15_s11 = int_to_ptr.hbm [resolvable:$true] %s14_s11 }
   0x3   :  { %s16_s13 = sshll.u32 %s583_s12, 4  ;;  %s27_s16 = sshll.u32 %s675_s1, 4  ;;  %s17_s13 = int_to_ptr.vmem [resolvable:$true] %s16_s13  ;;  %s28_s16 = int_to_ptr.hbm [resolvable:$true] %s27_s16 }
   0x4   :  { %s584_s17 = smov 256   ;;  %s585_s18 = smov 16  }
   0x5   :  { %22 = dma.hbm_to_vmem [thread:$0]  %s15_s11, 1280, %s17_s13, [#allocation3], %s584_s17, %s584_s17, %s585_s18  }
   0x6   :  { %s586_s19 = smov [#allocation5]   ;;  %s587_s21 = smov 512  }
   0x7   :  { %s29_s20 = sshll.u32 %s586_s19, 4  ;;  %s588_s0 = smov 32   ;;  %s30_s20 = int_to_ptr.vmem [resolvable:$true] %s29_s20 }
   0x8   :  { %35 = dma.hbm_to_vmem [thread:$0]  %s28_s16, 16384, %s30_s20, [#allocation6], %s587_s21, %s587_s21, %s588_s0  }
   0x9   :  { %577 = dma.done.wait [#allocation3], 1280  }
   0xa   :  { %578 = vsyncadd [#allocation3], 4294966016 }
   0xb   :  { %579 = dma.done.wait [#allocation6], 16384  }
   0xc   :  { %580 = vsyncadd [#allocation6], 4294950912  ;;  %v114_v0 = vld [vmem:[#allocation5 + $0x1e0] sm:$0xff]  ;;  %v115_v2 = vld [vmem:[#allocation5 + $0x1e8] sm:$0xff]  ;;  %s589_s1 = smov [#allocation7]   ;;  %s484_s25 = sshll.u32 %s676_s2, 4  ;;  %s485_s25 = int_to_ptr.hbm [resolvable:$true] %s484_s25 }
   0xd   :  { %v178_v1 = vld [vmem:[#allocation5 + $0x3e0] sm:$0xff]  ;;  %182 = vmatpush.msra.mxu0 %v114_v0  ;;  %v179_v3 = vld [vmem:[#allocation5 + $0x3e8] sm:$0xff]  ;;  %246 = vmatpush.msra.mxu2 %v115_v2  ;;  %v614_v0 = vld [vmem:[#allocation2] sm:$0xff]  ;;  %s482_s22 = sshll.u32 %s589_s1, 4  ;;  %s483_s22 = int_to_ptr.vmem [resolvable:$true] %s482_s22 }
   0xe   :  { %214 = vmatpush.msra.mxu1 %v178_v1  ;;  %v110_v4 = vld [vmem:[#allocation5 + $0x1c0] sm:$0xff]  ;;  %278 = vmatpush.msra.mxu3 %v179_v3  ;;  %v111_v6 = vld [vmem:[#allocation5 + $0x1c8] sm:$0xff]  ;;  %v616_v1 = vld [vmem:[#allocation2 + $0x8] sm:$0xff] }
   0xf   :  { %v174_v5 = vld [vmem:[#allocation5 + $0x3c0] sm:$0xff]  ;;  %v175_v7 = vld [vmem:[#allocation5 + $0x3c8] sm:$0xff]  ;;  %183 = vmatpush.msra.mxu0 %v110_v4  ;;  %247 = vmatpush.msra.mxu2 %v111_v6  ;;  %v117_v2 = vld [vmem:[#allocation5 + $0x1f8] sm:$0xff] }
  0x10   :  { %v106_v8 = vld [vmem:[#allocation5 + $0x1a0] sm:$0xff]  ;;  %215 = vmatpush.msra.mxu1 %v174_v5  ;;  %v107_v10 = vld [vmem:[#allocation5 + $0x1a8] sm:$0xff]  ;;  %279 = vmatpush.msra.mxu3 %v175_v7  ;;  %v181_v3 = vld [vmem:[#allocation5 + $0x3f8] sm:$0xff] }
  0x11   :  { %v170_v9 = vld [vmem:[#allocation5 + $0x3a0] sm:$0xff]  ;;  %v171_v11 = vld [vmem:[#allocation5 + $0x3a8] sm:$0xff]  ;;  %184 = vmatpush.msra.mxu0 %v106_v8  ;;  %248 = vmatpush.msra.mxu2 %v107_v10  ;;  %v116_v4 = vld [vmem:[#allocation5 + $0x1f0] sm:$0xff] }
  0x12   :  { %v102_v12 = vld [vmem:[#allocation5 + $0x180] sm:$0xff]  ;;  %216 = vmatpush.msra.mxu1 %v170_v9  ;;  %v103_v14 = vld [vmem:[#allocation5 + $0x188] sm:$0xff]  ;;  %280 = vmatpush.msra.mxu3 %v171_v11  ;;  %v180_v5 = vld [vmem:[#allocation5 + $0x3f0] sm:$0xff] }
  0x13   :  { %v166_v13 = vld [vmem:[#allocation5 + $0x380] sm:$0xff]  ;;  %v167_v15 = vld [vmem:[#allocation5 + $0x388] sm:$0xff]  ;;  %185 = vmatpush.msra.mxu0 %v102_v12  ;;  %249 = vmatpush.msra.mxu2 %v103_v14  ;;  %v113_v6 = vld [vmem:[#allocation5 + $0x1d8] sm:$0xff] }
  0x14   :  { %v98_v16 = vld [vmem:[#allocation5 + $0x160] sm:$0xff]  ;;  %217 = vmatpush.msra.mxu1 %v166_v13  ;;  %v99_v18 = vld [vmem:[#allocation5 + $0x168] sm:$0xff]  ;;  %281 = vmatpush.msra.mxu3 %v167_v15  ;;  %v177_v7 = vld [vmem:[#allocation5 + $0x3d8] sm:$0xff] }
  0x15   :  { %v162_v17 = vld [vmem:[#allocation5 + $0x360] sm:$0xff]  ;;  %v163_v19 = vld [vmem:[#allocation5 + $0x368] sm:$0xff]  ;;  %186 = vmatpush.msra.mxu0 %v98_v16  ;;  %250 = vmatpush.msra.mxu2 %v99_v18  ;;  %v112_v8 = vld [vmem:[#allocation5 + $0x1d0] sm:$0xff] }
  0x16   :  { %v94_v20 = vld [vmem:[#allocation5 + $0x140] sm:$0xff]  ;;  %218 = vmatpush.msra.mxu1 %v162_v17  ;;  %v95_v22 = vld [vmem:[#allocation5 + $0x148] sm:$0xff]  ;;  %282 = vmatpush.msra.mxu3 %v163_v19  ;;  %v176_v9 = vld [vmem:[#allocation5 + $0x3d0] sm:$0xff] }
  0x17   :  { %v158_v21 = vld [vmem:[#allocation5 + $0x340] sm:$0xff]  ;;  %v159_v23 = vld [vmem:[#allocation5 + $0x348] sm:$0xff]  ;;  %187 = vmatpush.msra.mxu0 %v94_v20  ;;  %251 = vmatpush.msra.mxu2 %v95_v22  ;;  %v109_v10 = vld [vmem:[#allocation5 + $0x1b8] sm:$0xff] }
  0x18   :  { %v90_v24 = vld [vmem:[#allocation5 + $0x120] sm:$0xff]  ;;  %219 = vmatpush.msra.mxu1 %v158_v21  ;;  %v91_v26 = vld [vmem:[#allocation5 + $0x128] sm:$0xff]  ;;  %283 = vmatpush.msra.mxu3 %v159_v23  ;;  %v173_v11 = vld [vmem:[#allocation5 + $0x3b8] sm:$0xff] }
  0x19   :  { %v154_v25 = vld [vmem:[#allocation5 + $0x320] sm:$0xff]  ;;  %v155_v27 = vld [vmem:[#allocation5 + $0x328] sm:$0xff]  ;;  %188 = vmatpush.msra.mxu0 %v90_v24  ;;  %252 = vmatpush.msra.mxu2 %v91_v26  ;;  %v108_v12 = vld [vmem:[#allocation5 + $0x1b0] sm:$0xff] }
  0x1a   :  { %v86_v28 = vld [vmem:[#allocation5 + $0x100] sm:$0xff]  ;;  %220 = vmatpush.msra.mxu1 %v154_v25  ;;  %v87_v30 = vld [vmem:[#allocation5 + $0x108] sm:$0xff]  ;;  %284 = vmatpush.msra.mxu3 %v155_v27  ;;  %v172_v13 = vld [vmem:[#allocation5 + $0x3b0] sm:$0xff] }
  0x1b   :  { %v150_v29 = vld [vmem:[#allocation5 + $0x300] sm:$0xff]  ;;  %v151_v31 = vld [vmem:[#allocation5 + $0x308] sm:$0xff]  ;;  %189 = vmatpush.msra.mxu0 %v86_v28  ;;  %253 = vmatpush.msra.mxu2 %v87_v30  ;;  %v105_v16 = vld [vmem:[#allocation5 + $0x198] sm:$0xff] }
  0x1c   :  { %v82_v32 = vld [vmem:[#allocation5 + $0xe0] sm:$0xff]  ;;  %221 = vmatpush.msra.mxu1 %v150_v29  ;;  %v83_v34 = vld [vmem:[#allocation5 + $0xe8] sm:$0xff]  ;;  %285 = vmatpush.msra.mxu3 %v151_v31  ;;  %v169_v17 = vld [vmem:[#allocation5 + $0x398] sm:$0xff] }
  0x1d   :  { %v146_v33 = vld [vmem:[#allocation5 + $0x2e0] sm:$0xff]  ;;  %v147_v35 = vld [vmem:[#allocation5 + $0x2e8] sm:$0xff]  ;;  %190 = vmatpush.msra.mxu0 %v82_v32  ;;  %254 = vmatpush.msra.mxu2 %v83_v34  ;;  %v104_v18 = vld [vmem:[#allocation5 + $0x190] sm:$0xff] }
  0x1e   :  { %v78_v36 = vld [vmem:[#allocation5 + $0xc0] sm:$0xff]  ;;  %222 = vmatpush.msra.mxu1 %v146_v33  ;;  %v79_v38 = vld [vmem:[#allocation5 + $0xc8] sm:$0xff]  ;;  %286 = vmatpush.msra.mxu3 %v147_v35  ;;  %v168_v19 = vld [vmem:[#allocation5 + $0x390] sm:$0xff] }
  0x1f   :  { %v142_v37 = vld [vmem:[#allocation5 + $0x2c0] sm:$0xff]  ;;  %v143_v39 = vld [vmem:[#allocation5 + $0x2c8] sm:$0xff]  ;;  %191 = vmatpush.msra.mxu0 %v78_v36  ;;  %255 = vmatpush.msra.mxu2 %v79_v38  ;;  %v101_v20 = vld [vmem:[#allocation5 + $0x178] sm:$0xff] }
  0x20   :  { %v74_v40 = vld [vmem:[#allocation5 + $0xa0] sm:$0xff]  ;;  %223 = vmatpush.msra.mxu1 %v142_v37  ;;  %v75_v42 = vld [vmem:[#allocation5 + $0xa8] sm:$0xff]  ;;  %287 = vmatpush.msra.mxu3 %v143_v39  ;;  %v165_v21 = vld [vmem:[#allocation5 + $0x378] sm:$0xff] }
  0x21   :  { %v138_v41 = vld [vmem:[#allocation5 + $0x2a0] sm:$0xff]  ;;  %v139_v43 = vld [vmem:[#allocation5 + $0x2a8] sm:$0xff]  ;;  %192 = vmatpush.msra.mxu0 %v74_v40  ;;  %256 = vmatpush.msra.mxu2 %v75_v42  ;;  %v100_v22 = vld [vmem:[#allocation5 + $0x170] sm:$0xff] }
  0x22   :  { %v70_v44 = vld [vmem:[#allocation5 + $0x80] sm:$0xff]  ;;  %224 = vmatpush.msra.mxu1 %v138_v41  ;;  %v71_v46 = vld [vmem:[#allocation5 + $0x88] sm:$0xff]  ;;  %288 = vmatpush.msra.mxu3 %v139_v43  ;;  %v164_v23 = vld [vmem:[#allocation5 + $0x370] sm:$0xff] }
  0x23   :  { %v134_v45 = vld [vmem:[#allocation5 + $0x280] sm:$0xff]  ;;  %v135_v47 = vld [vmem:[#allocation5 + $0x288] sm:$0xff]  ;;  %193 = vmatpush.msra.mxu0 %v70_v44  ;;  %257 = vmatpush.msra.mxu2 %v71_v46  ;;  %v97_v24 = vld [vmem:[#allocation5 + $0x158] sm:$0xff] }
  0x24   :  { %v66_v48 = vld [vmem:[#allocation5 + $0x60] sm:$0xff]  ;;  %225 = vmatpush.msra.mxu1 %v134_v45  ;;  %v67_v50 = vld [vmem:[#allocation5 + $0x68] sm:$0xff]  ;;  %289 = vmatpush.msra.mxu3 %v135_v47  ;;  %v161_v25 = vld [vmem:[#allocation5 + $0x358] sm:$0xff] }
  0x25   :  { %v130_v49 = vld [vmem:[#allocation5 + $0x260] sm:$0xff]  ;;  %v131_v51 = vld [vmem:[#allocation5 + $0x268] sm:$0xff]  ;;  %194 = vmatpush.msra.mxu0 %v66_v48  ;;  %258 = vmatpush.msra.mxu2 %v67_v50  ;;  %v96_v26 = vld [vmem:[#allocation5 + $0x150] sm:$0xff] }
  0x26   :  { %v62_v52 = vld [vmem:[#allocation5 + $0x40] sm:$0xff]  ;;  %226 = vmatpush.msra.mxu1 %v130_v49  ;;  %v63_v54 = vld [vmem:[#allocation5 + $0x48] sm:$0xff]  ;;  %290 = vmatpush.msra.mxu3 %v131_v51  ;;  %v160_v27 = vld [vmem:[#allocation5 + $0x350] sm:$0xff] }
  0x27   :  { %v126_v53 = vld [vmem:[#allocation5 + $0x240] sm:$0xff]  ;;  %v127_v55 = vld [vmem:[#allocation5 + $0x248] sm:$0xff]  ;;  %195 = vmatpush.msra.mxu0 %v62_v52  ;;  %259 = vmatpush.msra.mxu2 %v63_v54  ;;  %v93_v28 = vld [vmem:[#allocation5 + $0x138] sm:$0xff] }
  0x28   :  { %v58_v56 = vld [vmem:[#allocation5 + $0x20] sm:$0xff]  ;;  %227 = vmatpush.msra.mxu1 %v126_v53  ;;  %v59_v58 = vld [vmem:[#allocation5 + $0x28] sm:$0xff]  ;;  %291 = vmatpush.msra.mxu3 %v127_v55  ;;  %v157_v29 = vld [vmem:[#allocation5 + $0x338] sm:$0xff] }
  0x29   :  { %v122_v57 = vld [vmem:[#allocation5 + $0x220] sm:$0xff]  ;;  %v123_v59 = vld [vmem:[#allocation5 + $0x228] sm:$0xff]  ;;  %196 = vmatpush.msra.mxu0 %v58_v56  ;;  %260 = vmatpush.msra.mxu2 %v59_v58  ;;  %v630_v30 = vld [vmem:[#allocation2 + $0x20] sm:$0xff] }
  0x2a   :  { %v54_v60 = vld [vmem:[#allocation5] sm:$0xff]  ;;  %228 = vmatpush.msra.mxu1 %v122_v57  ;;  %v55_v62 = vld [vmem:[#allocation5 + $0x8] sm:$0xff]  ;;  %292 = vmatpush.msra.mxu3 %v123_v59  ;;  %v632_v31 = vld [vmem:[#allocation2 + $0x28] sm:$0xff] }
  0x2b   :  { %v118_v61 = vld [vmem:[#allocation5 + $0x200] sm:$0xff]  ;;  %v119_v63 = vld [vmem:[#allocation5 + $0x208] sm:$0xff]  ;;  %197 = vmatpush.msra.mxu0 %v54_v60  ;;  %261 = vmatpush.msra.mxu2 %v55_v62  ;;  %v89_v32 = vld [vmem:[#allocation5 + $0x118] sm:$0xff] }
  0x2c   :  { %229 = vmatpush.msra.mxu1 %v118_v61  ;;  %293 = vmatpush.msra.mxu3 %v119_v63  ;;  %v622_v14 = vld [vmem:[#allocation2 + $0x10] sm:$0xff]  ;;  %v624_v15 = vld [vmem:[#allocation2 + $0x18] sm:$0xff]  ;;  %v153_v33 = vld [vmem:[#allocation5 + $0x318] sm:$0xff] }
  0x2d   :  { %198 = vmatmul.f32.vlgmr.msra.gmra.mxu0 %v614_v0  ;;  %230 = vmatmul.f32.vlgmr.msra.gmra.mxu1 %v616_v1  ;;  %v92_v34 = vld [vmem:[#allocation5 + $0x130] sm:$0xff]  ;;  %v85_v36 = vld [vmem:[#allocation5 + $0xf8] sm:$0xff]  ;;  %v638_v44 = vld [vmem:[#allocation2 + $0x30] sm:$0xff] }
  0x2e   :  { %262 = vmatmul.f32.vlgmr.msra.gmra.mxu2 %v614_v0  ;;  %294 = vmatmul.f32.vlgmr.msra.gmra.mxu3 %v616_v1  ;;  %v156_v35 = vld [vmem:[#allocation5 + $0x330] sm:$0xff]  ;;  %v149_v37 = vld [vmem:[#allocation5 + $0x2f8] sm:$0xff]  ;;  %v640_v45 = vld [vmem:[#allocation2 + $0x38] sm:$0xff] }
  0x2f   :  { %374 = vmatpush.msrb.mxu2 %v117_v2  ;;  %406 = vmatpush.msrb.mxu3 %v181_v3  ;;  %v88_v38 = vld [vmem:[#allocation5 + $0x110] sm:$0xff]  ;;  %v81_v40 = vld [vmem:[#allocation5 + $0xd8] sm:$0xff] }
  0x30   :  { %310 = vmatpush.msrb.mxu0 %v116_v4  ;;  %342 = vmatpush.msrb.mxu1 %v180_v5  ;;  %v152_v39 = vld [vmem:[#allocation5 + $0x310] sm:$0xff]  ;;  %v145_v41 = vld [vmem:[#allocation5 + $0x2d8] sm:$0xff] }
  0x31   :  { %375 = vmatpush.msrb.mxu2 %v113_v6  ;;  %407 = vmatpush.msrb.mxu3 %v177_v7  ;;  %v84_v42 = vld [vmem:[#allocation5 + $0xf0] sm:$0xff]  ;;  %v77_v46 = vld [vmem:[#allocation5 + $0xb8] sm:$0xff] }
  0x32   :  { %311 = vmatpush.msrb.mxu0 %v112_v8  ;;  %343 = vmatpush.msrb.mxu1 %v176_v9  ;;  %v148_v43 = vld [vmem:[#allocation5 + $0x2f0] sm:$0xff]  ;;  %v141_v47 = vld [vmem:[#allocation5 + $0x2b8] sm:$0xff] }
  0x33   :  { %376 = vmatpush.msrb.mxu2 %v109_v10  ;;  %408 = vmatpush.msrb.mxu3 %v173_v11  ;;  %v80_v48 = vld [vmem:[#allocation5 + $0xd0] sm:$0xff]  ;;  %v73_v50 = vld [vmem:[#allocation5 + $0x98] sm:$0xff] }
  0x34   :  { %312 = vmatpush.msrb.mxu0 %v108_v12  ;;  %344 = vmatpush.msrb.mxu1 %v172_v13  ;;  %v144_v49 = vld [vmem:[#allocation5 + $0x2d0] sm:$0xff]  ;;  %v137_v51 = vld [vmem:[#allocation5 + $0x298] sm:$0xff] }
  0x35   :  { %201 = vmatmul.f32.gmra.mxu0 %v622_v14  ;;  %233 = vmatmul.f32.gmra.mxu1 %v624_v15  ;;  %v76_v52 = vld [vmem:[#allocation5 + $0xb0] sm:$0xff]  ;;  %v69_v54 = vld [vmem:[#allocation5 + $0x78] sm:$0xff] }
  0x36   :  { %265 = vmatmul.f32.gmra.mxu2 %v622_v14  ;;  %297 = vmatmul.f32.gmra.mxu3 %v624_v15  ;;  %v140_v53 = vld [vmem:[#allocation5 + $0x2b0] sm:$0xff]  ;;  %v133_v55 = vld [vmem:[#allocation5 + $0x278] sm:$0xff] }
  0x37   :  { %377 = vmatpush.msrb.mxu2 %v105_v16  ;;  %409 = vmatpush.msrb.mxu3 %v169_v17  ;;  %v72_v56 = vld [vmem:[#allocation5 + $0x90] sm:$0xff]  ;;  %v53_v59 = vld [vmem:[#allocation2 + $0x48] sm:$0xff] }
  0x38   :  { %313 = vmatpush.msrb.mxu0 %v104_v18  ;;  %345 = vmatpush.msrb.mxu1 %v168_v19  ;;  %v136_v57 = vld [vmem:[#allocation5 + $0x290] sm:$0xff]  ;;  %v65_v62 = vld [vmem:[#allocation5 + $0x58] sm:$0xff] }
  0x39   :  { %378 = vmatpush.msrb.mxu2 %v101_v20  ;;  %410 = vmatpush.msrb.mxu3 %v165_v21  ;;  %v52_v58 = vld [vmem:[#allocation2 + $0x40] sm:$0xff]  ;;  %v129_v63 = vld [vmem:[#allocation5 + $0x258] sm:$0xff] }
  0x3a   :  { %314 = vmatpush.msrb.mxu0 %v100_v22  ;;  %346 = vmatpush.msrb.mxu1 %v164_v23  ;;  %v68_v60 = vld [vmem:[#allocation5 + $0x70] sm:$0xff]  ;;  %v61_v4 = vld [vmem:[#allocation5 + $0x38] sm:$0xff] }
  0x3b   :  { %379 = vmatpush.msrb.mxu2 %v97_v24  ;;  %411 = vmatpush.msrb.mxu3 %v161_v25  ;;  %v132_v61 = vld [vmem:[#allocation5 + $0x270] sm:$0xff]  ;;  %v125_v5 = vld [vmem:[#allocation5 + $0x238] sm:$0xff] }
  0x3c   :  { %315 = vmatpush.msrb.mxu0 %v96_v26  ;;  %347 = vmatpush.msrb.mxu1 %v160_v27  ;;  %v64_v2 = vld [vmem:[#allocation5 + $0x50] sm:$0xff]  ;;  %v57_v8 = vld [vmem:[#allocation5 + $0x18] sm:$0xff] }
  0x3d   :  { %380 = vmatpush.msrb.mxu2 %v93_v28  ;;  %412 = vmatpush.msrb.mxu3 %v157_v29  ;;  %v128_v3 = vld [vmem:[#allocation5 + $0x250] sm:$0xff]  ;;  %v121_v9 = vld [vmem:[#allocation5 + $0x218] sm:$0xff] }
  0x3e   :  { %204 = vmatmul.f32.gmra.mxu0 %v630_v30  ;;  %236 = vmatmul.f32.gmra.mxu1 %v632_v31  ;;  %v60_v6 = vld [vmem:[#allocation5 + $0x30] sm:$0xff] }
  0x3f   :  { %268 = vmatmul.f32.gmra.mxu2 %v630_v30  ;;  %300 = vmatmul.f32.gmra.mxu3 %v632_v31  ;;  %v124_v7 = vld [vmem:[#allocation5 + $0x230] sm:$0xff] }
  0x40   :  { %381 = vmatpush.msrb.mxu2 %v89_v32  ;;  %413 = vmatpush.msrb.mxu3 %v153_v33  ;;  %v56_v10 = vld [vmem:[#allocation5 + $0x10] sm:$0xff] }
  0x41   :  { %316 = vmatpush.msrb.mxu0 %v92_v34  ;;  %348 = vmatpush.msrb.mxu1 %v156_v35  ;;  %v120_v11 = vld [vmem:[#allocation5 + $0x210] sm:$0xff] }
  0x42   :  { %382 = vmatpush.msrb.mxu2 %v85_v36  ;;  %414 = vmatpush.msrb.mxu3 %v149_v37 }
  0x43   :  { %317 = vmatpush.msrb.mxu0 %v88_v38  ;;  %349 = vmatpush.msrb.mxu1 %v152_v39 }
  0x44   :  { %383 = vmatpush.msrb.mxu2 %v81_v40  ;;  %415 = vmatpush.msrb.mxu3 %v145_v41 }
  0x45   :  { %318 = vmatpush.msrb.mxu0 %v84_v42  ;;  %350 = vmatpush.msrb.mxu1 %v148_v43 }
  0x46   :  { %207 = vmatmul.f32.gmra.mxu0 %v638_v44  ;;  %239 = vmatmul.f32.gmra.mxu1 %v640_v45 }
  0x47   :  { %271 = vmatmul.f32.gmra.mxu2 %v638_v44  ;;  %303 = vmatmul.f32.gmra.mxu3 %v640_v45 }
  0x48   :  { %384 = vmatpush.msrb.mxu2 %v77_v46  ;;  %416 = vmatpush.msrb.mxu3 %v141_v47 }
  0x49   :  { %319 = vmatpush.msrb.mxu0 %v80_v48  ;;  %351 = vmatpush.msrb.mxu1 %v144_v49 }
  0x4a   :  { %385 = vmatpush.msrb.mxu2 %v73_v50  ;;  %417 = vmatpush.msrb.mxu3 %v137_v51 }
  0x4b   :  { %320 = vmatpush.msrb.mxu0 %v76_v52  ;;  %352 = vmatpush.msrb.mxu1 %v140_v53 }
  0x4c   :  { %386 = vmatpush.msrb.mxu2 %v69_v54  ;;  %418 = vmatpush.msrb.mxu3 %v133_v55 }
  0x4d   :  { %321 = vmatpush.msrb.mxu0 %v72_v56  ;;  %353 = vmatpush.msrb.mxu1 %v136_v57 }
  0x4e   :  { %210 = vmatmul.f32.gmra.mxu0 %v52_v58  ;;  %242 = vmatmul.f32.gmra.mxu1 %v53_v59 }
  0x4f   :  { %274 = vmatmul.f32.gmra.mxu2 %v52_v58  ;;  %306 = vmatmul.f32.gmra.mxu3 %v53_v59 }
  0x50   :  { %322 = vmatpush.msrb.mxu0 %v68_v60  ;;  %354 = vmatpush.msrb.mxu1 %v132_v61 }
  0x51   :  { %387 = vmatpush.msrb.mxu2 %v65_v62  ;;  %419 = vmatpush.msrb.mxu3 %v129_v63 }
  0x52   :  { %323 = vmatpush.msrb.mxu0 %v64_v2  ;;  %355 = vmatpush.msrb.mxu1 %v128_v3 }
  0x53   :  { %388 = vmatpush.msrb.mxu2 %v61_v4  ;;  %420 = vmatpush.msrb.mxu3 %v125_v5 }
  0x54   :  { %324 = vmatpush.msrb.mxu0 %v60_v6  ;;  %356 = vmatpush.msrb.mxu1 %v124_v7 }
  0x55   :  { %389 = vmatpush.msrb.mxu2 %v57_v8  ;;  %421 = vmatpush.msrb.mxu3 %v121_v9 }
  0x56   :  { %325 = vmatpush.msrb.mxu0 %v56_v10  ;;  %357 = vmatpush.msrb.mxu1 %v120_v11 }
  0x57   :  { %326 = vmatmul.f32.vlgmr.msrb.gmra.mxu0 %v614_v0  ;;  %358 = vmatmul.f32.vlgmr.msrb.gmra.mxu1 %v616_v1 }
  0x58   :  { %390 = vmatmul.f32.vlgmr.msrb.gmra.mxu2 %v614_v0  ;;  %422 = vmatmul.f32.vlgmr.msrb.gmra.mxu3 %v616_v1 }
  0x5f   :  { %329 = vmatmul.f32.gmra.mxu0 %v622_v14  ;;  %361 = vmatmul.f32.gmra.mxu1 %v624_v15 }
  0x60   :  { %393 = vmatmul.f32.gmra.mxu2 %v622_v14  ;;  %425 = vmatmul.f32.gmra.mxu3 %v624_v15 }
  0x67   :  { %332 = vmatmul.f32.gmra.mxu0 %v630_v30  ;;  %364 = vmatmul.f32.gmra.mxu1 %v632_v31 }
  0x68   :  { %396 = vmatmul.f32.gmra.mxu2 %v630_v30  ;;  %428 = vmatmul.f32.gmra.mxu3 %v632_v31 }
  0x6f   :  { %335 = vmatmul.f32.gmra.mxu0 %v638_v44  ;;  %367 = vmatmul.f32.gmra.mxu1 %v640_v45 }
  0x70   :  { %399 = vmatmul.f32.gmra.mxu2 %v638_v44  ;;  %431 = vmatmul.f32.gmra.mxu3 %v640_v45 }
  0x77   :  { %338 = vmatmul.f32.gmra.mxu0 %v52_v58  ;;  %370 = vmatmul.f32.gmra.mxu1 %v53_v59 }
  0x78   :  { %402 = vmatmul.f32.gmra.mxu2 %v52_v58  ;;  %434 = vmatmul.f32.gmra.mxu3 %v53_v59 }
  0xaa   :  { %v199_v0 = vpop.f32.mrf.mxu0  ;;  %v231_v1 = vpop.f32.mrf.mxu1 }
  0xab   :  { %v232_v30 = vadd.f32 %v231_v1, %v199_v0 }
  0xad   :  { %v438_v34 = vmul.f32 %v232_v30, %v232_v30 }
  0xb1   :  { %v263_v12 = vpop.f32.mrf.mxu2  ;;  %v295_v13 = vpop.f32.mrf.mxu3 }
  0xb2   :  { %v202_v14 = vpop.f32.mrf.mxu0  ;;  %v234_v15 = vpop.f32.mrf.mxu1  ;;  %v296_v37 = vadd.f32 %v295_v13, %v263_v12 }
  0xb3   :  { %v235_v38 = vadd.f32 %v234_v15, %v202_v14 }
  0xb4   :  { %v439_v45 = vmul.f32 %v296_v37, %v296_v37 }
  0xb5   :  { %v440_v47 = vmul.f32 %v235_v38, %v235_v38 }
  0xb9   :  { %v266_v16 = vpop.f32.mrf.mxu2  ;;  %v298_v17 = vpop.f32.mrf.mxu3 }
  0xba   :  { %v299_v51 = vadd.f32 %v298_v17, %v266_v16 }
  0xbb   :  { %v205_v18 = vpop.f32.mrf.mxu0  ;;  %v237_v19 = vpop.f32.mrf.mxu1 }
  0xbc   :  { %v238_v52 = vadd.f32 %v237_v19, %v205_v18  ;;  %v441_v59 = vmul.f32 %v299_v51, %v299_v51 }
  0xbe   :  { %v442_v61 = vmul.f32 %v238_v52, %v238_v52 }
  0xc2   :  { %v269_v20 = vpop.f32.mrf.mxu2  ;;  %v301_v21 = vpop.f32.mrf.mxu3 }
  0xc3   :  { %v208_v22 = vpop.f32.mrf.mxu0  ;;  %v240_v23 = vpop.f32.mrf.mxu1  ;;  %v302_v3 = vadd.f32 %v301_v21, %v269_v20 }
  0xc4   :  { %v241_v4 = vadd.f32 %v240_v23, %v208_v22 }
  0xc5   :  { %v443_v11 = vmul.f32 %v302_v3, %v302_v3 }
  0xc6   :  { %v444_v1 = vmul.f32 %v241_v4, %v241_v4 }
  0xca   :  { %v272_v24 = vpop.f32.mrf.mxu2  ;;  %v304_v25 = vpop.f32.mrf.mxu3 }
  0xcb   :  { %v211_v26 = vpop.f32.mrf.mxu0  ;;  %v243_v27 = vpop.f32.mrf.mxu1  ;;  %v305_v15 = vadd.f32 %v304_v25, %v272_v24 }
  0xcc   :  { %v244_v16 = vadd.f32 %v243_v27, %v211_v26 }
  0xcd   :  { %v445_v23 = vmul.f32 %v305_v15, %v305_v15 }
  0xd2   :  { %v662_v28 = vpop.f32.mrf.mxu2  ;;  %v664_v29 = vpop.f32.mrf.mxu3 }
  0xd4   :  { %v327_v31 = vpop.f32.mrf.mxu0  ;;  %v359_v32 = vpop.f32.mrf.mxu1 }
  0xd5   :  { %v360_v33 = vadd.f32 %v359_v32, %v327_v31  ;;  %v446_v31 = vmul.f32 %v244_v16, %v244_v16 }
  0xd7   :  { %v448_v35 = vmul.f32 %v360_v33, %v360_v33 }
  0xd9   :  { %v458_v36 = vadd.f32 %v448_v35, %v438_v34  ;;  %v308_v35 = vadd.f32 %v664_v29, %v662_v28 }
  0xdb   :  { %468 = vst [vmem:[#allocation7] sm:$0xff] %v458_v36  ;;  %v391_v39 = vpop.f32.mrf.mxu2  ;;  %v423_v40 = vpop.f32.mrf.mxu3  ;;  %v447_v27 = vmul.f32 %v308_v35, %v308_v35 }
  0xdc   :  { %v424_v41 = vadd.f32 %v423_v40, %v391_v39  ;;  %v330_v42 = vpop.f32.mrf.mxu0  ;;  %v362_v43 = vpop.f32.mrf.mxu1 }
  0xdd   :  { %v363_v44 = vadd.f32 %v362_v43, %v330_v42 }
  0xde   :  { %v449_v46 = vmul.f32 %v424_v41, %v424_v41 }
  0xdf   :  { %v450_v48 = vmul.f32 %v363_v44, %v363_v44 }
  0xe0   :  { %v459_v49 = vadd.f32 %v449_v46, %v439_v45 }
  0xe1   :  { %v460_v50 = vadd.f32 %v450_v48, %v440_v47 }
  0xe2   :  { %469 = vst [vmem:[#allocation7 + $0x8] sm:$0xff] %v459_v49 }
  0xe3   :  { %470 = vst [vmem:[#allocation7 + $0x10] sm:$0xff] %v460_v50  ;;  %v394_v53 = vpop.f32.mrf.mxu2  ;;  %v426_v54 = vpop.f32.mrf.mxu3 }
  0xe4   :  { %v427_v55 = vadd.f32 %v426_v54, %v394_v53  ;;  %v333_v56 = vpop.f32.mrf.mxu0  ;;  %v365_v57 = vpop.f32.mrf.mxu1 }
  0xe5   :  { %v366_v58 = vadd.f32 %v365_v57, %v333_v56 }
  0xe6   :  { %v451_v60 = vmul.f32 %v427_v55, %v427_v55 }
  0xe7   :  { %v452_v62 = vmul.f32 %v366_v58, %v366_v58 }
  0xe8   :  { %v461_v63 = vadd.f32 %v451_v60, %v441_v59 }
  0xe9   :  { %v462_v2 = vadd.f32 %v452_v62, %v442_v61 }
  0xea   :  { %471 = vst [vmem:[#allocation7 + $0x18] sm:$0xff] %v461_v63 }
  0xeb   :  { %472 = vst [vmem:[#allocation7 + $0x20] sm:$0xff] %v462_v2  ;;  %v397_v5 = vpop.f32.mrf.mxu2  ;;  %v429_v6 = vpop.f32.mrf.mxu3 }
  0xec   :  { %v430_v7 = vadd.f32 %v429_v6, %v397_v5  ;;  %v336_v8 = vpop.f32.mrf.mxu0  ;;  %v368_v9 = vpop.f32.mrf.mxu1 }
  0xed   :  { %v369_v10 = vadd.f32 %v368_v9, %v336_v8 }
  0xee   :  { %v453_v0 = vmul.f32 %v430_v7, %v430_v7 }
  0xef   :  { %v454_v12 = vmul.f32 %v369_v10, %v369_v10 }
  0xf0   :  { %v463_v13 = vadd.f32 %v453_v0, %v443_v11 }
  0xf1   :  { %v464_v14 = vadd.f32 %v454_v12, %v444_v1 }
  0xf2   :  { %473 = vst [vmem:[#allocation7 + $0x28] sm:$0xff] %v463_v13 }
  0xf3   :  { %474 = vst [vmem:[#allocation7 + $0x30] sm:$0xff] %v464_v14  ;;  %v400_v17 = vpop.f32.mrf.mxu2  ;;  %v432_v18 = vpop.f32.mrf.mxu3 }
  0xf4   :  { %v433_v19 = vadd.f32 %v432_v18, %v400_v17  ;;  %v339_v20 = vpop.f32.mrf.mxu0  ;;  %v371_v21 = vpop.f32.mrf.mxu1 }
  0xf5   :  { %v372_v22 = vadd.f32 %v371_v21, %v339_v20 }
  0xf6   :  { %v455_v30 = vmul.f32 %v433_v19, %v433_v19 }
  0xf7   :  { %v456_v32 = vmul.f32 %v372_v22, %v372_v22 }
  0xf8   :  { %v465_v33 = vadd.f32 %v455_v30, %v445_v23 }
  0xf9   :  { %v466_v34 = vadd.f32 %v456_v32, %v446_v31 }
  0xfa   :  { %475 = vst [vmem:[#allocation7 + $0x38] sm:$0xff] %v465_v33 }
  0xfb   :  { %476 = vst [vmem:[#allocation7 + $0x40] sm:$0xff] %v466_v34  ;;  %v403_v24 = vpop.f32.mrf.mxu2  ;;  %v435_v25 = vpop.f32.mrf.mxu3 }
  0xfc   :  { %v436_v26 = vadd.f32 %v435_v25, %v403_v24 }
  0xfe   :  { %v457_v36 = vmul.f32 %v436_v26, %v436_v26 }
 0x100   :  { %v467_v37 = vadd.f32 %v457_v36, %v447_v27 }
 0x102   :  { %477 = vst [vmem:[#allocation7 + $0x48] sm:$0xff] %v467_v37 }
 0x103   :  { %490 = dma.vmem_to_hbm [thread:$0]  %s483_s22, 1280, %s485_s25, [#allocation4], %s584_s17, %s584_s17, %s585_s18  }
 0x104   :  { %581 = dma.done.wait [#allocation4], 1280  }
 0x105   :  { %582 = vsyncadd [#allocation4], 4294966016 }
 0x106   :  { %495 = vsyncpa [#allocation3], 1 }
 0x107   :  { %496 = vsyncpa [#allocation6], 1 }
 0x108   :  { %497 = vsyncpa [#allocation4], 1 }

</bundles_post_ra>
